<compile_context>
chip_gen: v6e
topology: v6e:2x2x1
jax: 0.10.0
libtpu: 0.0.40
codegen_flags: <defaults>
</compile_context>

<pallas_src>
import functools

import jax
import jax.numpy as jnp
from jax import lax
from jax.experimental import pallas as pl
from jax.experimental.pallas import tpu as pltpu


def _round_up(n, m):
    return ((n + m - 1) // m) * m


def _word_embedding_kernel(x_ref, w1_ref, b1_ref, w2_ref, b2_ref, o_ref, *, batch):
    """One output-vocab tile of the forward pass.

    x_ref : [Bp, Vp]    padded input (compute dtype), resident across the grid
    w1_ref: [Ep, Vp]    PyTorch layout [out, in], padded, resident
    b1_ref: [1,  Ep]    f32
    w2_ref: [TV, Ep]    PyTorch layout [out, in], tile over output-vocab axis
    b2_ref: [1,  TV]    f32
    o_ref : [Bp, TV]    f32 log-softmax over axis 0 (batch)
    """
    x = x_ref[...]

    # out1 = x @ w1.T + b1  -- contract x axis 1 with w1 axis 1 directly
    # (no separate transpose op, no extra HBM round trip of the weights).
    out1 = lax.dot_general(
        x, w1_ref[...],
        dimension_numbers=(((1,), (1,)), ((), ())),
        preferred_element_type=jnp.float32,
    ) + b1_ref[...]

    # out2 = out1 @ w2.T + b2 for this tile of output-vocab columns.
    out2 = lax.dot_general(
        out1.astype(x.dtype), w2_ref[...],
        dimension_numbers=(((1,), (1,)), ((), ())),
        preferred_element_type=jnp.float32,
    ) + b2_ref[...]

    # log_softmax over dim=0 (the batch axis), matching F.log_softmax(out2, 0).
    # Padded batch rows (if any) are pushed far negative so they contribute
    # nothing to the max/sum; they are sliced away outside the kernel.
    if batch != out2.shape[0]:
        row = lax.broadcasted_iota(jnp.int32, out2.shape, 0)
        out2 = jnp.where(row < batch, out2, jnp.float32(-1e30))

    m = jnp.max(out2, axis=0, keepdims=True)
    z = out2 - m
    lse = jnp.log(jnp.sum(jnp.exp(z), axis=0, keepdims=True))
    o_ref[...] = (z - lse).astype(o_ref.dtype)


def prepare_params(w1, b1, w2, b2, *, compute_dtype=jnp.float32, tile_v=128):
    """Pad / cast parameters ONCE, outside the per-call hot path.

    w1: [E, V], b1: [E], w2: [V, E], b2: [V]   (PyTorch nn.Linear layout)
    Weights are stored lane-dense in `compute_dtype` (use bf16 on v6e/v7x to
    halve HBM weight traffic); biases stay f32 for the f32 epilogue.
    """
    assert tile_v % 128 == 0
    E, V = w1.shape
    Vp = _round_up(V, tile_v)
    Ep = _round_up(E, 128)
    w1p = jnp.zeros((Ep, Vp), compute_dtype).at[:E, :V].set(w1.astype(compute_dtype))
    b1p = jnp.zeros((1, Ep), jnp.float32).at[0, :E].set(b1.astype(jnp.float32))
    w2p = jnp.zeros((Vp, Ep), compute_dtype).at[:V, :E].set(w2.astype(compute_dtype))
    b2p = jnp.zeros((1, Vp), jnp.float32).at[0, :V].set(b2.astype(jnp.float32))
    return w1p, b1p, w2p, b2p


@functools.partial(jax.jit, static_argnames=("vocab_size", "tile_v"))
def word_embedding_forward(x, w1p, b1p, w2p, b2p, *, vocab_size, tile_v=128):
    """x: [B, vocab_size] float32. Padded params from prepare_params()."""
    B, V = x.shape
    Ep, Vp = w1p.shape
    assert V == vocab_size and Vp % tile_v == 0
    compute_dtype = w1p.dtype

    Bp = _round_up(max(B, 8), 8)                     # sublane-aligned batch
    xp = jnp.zeros((Bp, Vp), compute_dtype).at[:B, :V].set(x.astype(compute_dtype))

    nv = Vp // tile_v
    kernel = functools.partial(_word_embedding_kernel, batch=B)

    out_p = pl.pallas_call(
        kernel,
        out_shape=jax.ShapeDtypeStruct((Bp, Vp), jnp.float32),
        grid_spec=pltpu.PrefetchScalarGridSpec(
            num_scalar_prefetch=0,
            grid=(nv,),
            in_specs=[
                pl.BlockSpec((Bp, Vp), lambda j: (0, 0)),       # x (resident)
                pl.BlockSpec((Ep, Vp), lambda j: (0, 0)),       # w1 (resident)
                pl.BlockSpec((1, Ep), lambda j: (0, 0)),        # b1
                pl.BlockSpec((tile_v, Ep), lambda j: (j, 0)),   # w2 tile
                pl.BlockSpec((1, tile_v), lambda j: (0, j)),    # b2 tile
            ],
            out_specs=pl.BlockSpec((Bp, tile_v), lambda j: (0, j)),
        ),
        compiler_params=pltpu.CompilerParams(
            dimension_semantics=("parallel",),       # v7x: split V-tiles over 2 TCs
        ),
    )(xp, w1p, b1p, w2p, b2p)

    return out_p[:B, :vocab_size]


def _reference_forward(x, w1, b1, w2, b2):
    out1 = x @ w1.T + b1
    out2 = out1 @ w2.T + b2
    return jax.nn.log_softmax(out2, axis=0)


if __name__ == "__main__":
    vocab_size = 15
    embedding_dim = 5
    batch = 8

    key = jax.random.PRNGKey(0)
    kx, k1, k2, k3, k4 = jax.random.split(key, 5)

    # Deterministic "PyTorch-Linear-style" init: U(-1/sqrt(fan_in), 1/sqrt(fan_in))
    bound1 = 1.0 / jnp.sqrt(jnp.float32(vocab_size))
    bound2 = 1.0 / jnp.sqrt(jnp.float32(embedding_dim))
    w1 = jax.random.uniform(k1, (embedding_dim, vocab_size), jnp.float32, -bound1, bound1)
    b1 = jax.random.uniform(k2, (embedding_dim,), jnp.float32, -bound1, bound1)
    w2 = jax.random.uniform(k3, (vocab_size, embedding_dim), jnp.float32, -bound2, bound2)
    b2 = jax.random.uniform(k4, (vocab_size,), jnp.float32, -bound2, bound2)

    x = jax.random.uniform(kx, (batch, vocab_size), jnp.float32)

    ref = _reference_forward(x, w1, b1, w2, b2)

    # f32 path (exact check against the reference).
    p32 = prepare_params(w1, b1, w2, b2, compute_dtype=jnp.float32)
    out = word_embedding_forward(x, *p32, vocab_size=vocab_size)
    out = jax.block_until_ready(out)
    assert out.shape == (batch, vocab_size)
    assert jnp.allclose(out, ref, atol=1e-5, rtol=1e-5), "f32 mismatch vs JAX reference"

    # bf16 weight/activation path (halves HBM weight traffic on v6e/v7x);
    # matmul accumulation and the log-softmax epilogue remain f32.
    pbf = prepare_params(w1, b1, w2, b2, compute_dtype=jnp.bfloat16)
    out_bf = jax.block_until_ready(word_embedding_forward(x, *pbf, vocab_size=vocab_size))
    assert out_bf.shape == (batch, vocab_size)
    assert jnp.allclose(out_bf, ref, atol=5e-2), "bf16 mismatch vs JAX reference"

    print("KERNEL_OK")
</pallas_src>

<mosaic_0001>
module attributes {stable_mosaic.version = 11 : i64} {
  func.func @_word_embedding_kernel(%arg0: i32, %arg1: memref<8x128xf32, #tpu.memory_space<vmem>>, %arg2: memref<128x128xf32, #tpu.memory_space<vmem>>, %arg3: memref<1x128xf32, #tpu.memory_space<vmem>>, %arg4: memref<128x128xf32, #tpu.memory_space<vmem>>, %arg5: memref<1x128xf32, #tpu.memory_space<vmem>>, %arg6: memref<8x128xf32, #tpu.memory_space<vmem>>) attributes {dimension_semantics = [#tpu.dimension_semantics<parallel>], iteration_bounds = array<i64: 1>, scalar_prefetch = 0 : i64, scratch_operands = 0 : i64, tpu.core_type = #tpu.core_type<tc>, window_params = [{pipeline_mode = #tpu.pipeline_mode<synchronous>, transform_indices = @transform_0, window_bounds = array<i64: 8, 128>}, {pipeline_mode = #tpu.pipeline_mode<synchronous>, transform_indices = @transform_1, window_bounds = array<i64: 128, 128>}, {pipeline_mode = #tpu.pipeline_mode<synchronous>, transform_indices = @transform_2, window_bounds = array<i64: 1, 128>}, {transform_indices = @transform_3, window_bounds = array<i64: 128, 128>}, {transform_indices = @transform_4, window_bounds = array<i64: 1, 128>}, {transform_indices = @transform_5, window_bounds = array<i64: 8, 128>}]} {
    %c0 = arith.constant 0 : index
    %c0_0 = arith.constant 0 : index
    %0 = vector.load %arg1[%c0, %c0_0] : memref<8x128xf32, #tpu.memory_space<vmem>>, vector<8x128xf32>
    %c0_1 = arith.constant 0 : index
    %c0_2 = arith.constant 0 : index
    %1 = vector.load %arg2[%c0_1, %c0_2] : memref<128x128xf32, #tpu.memory_space<vmem>>, vector<128x128xf32>
    %cst = arith.constant dense<0.000000e+00> : vector<8x128xf32>
    %2 = tpu.matmul %0, %1, %cst {dimension_numbers = #tpu.dot_dimension_numbers<[1], [1], [0], [0], [0, 0, 1, 0], [], []>} : vector<8x128xf32>, vector<128x128xf32>, vector<8x128xf32> -> vector<8x128xf32>
    %c0_3 = arith.constant 0 : index
    %c0_4 = arith.constant 0 : index
    %3 = vector.load %arg3[%c0_3, %c0_4] : memref<1x128xf32, #tpu.memory_space<vmem>>, vector<1x128xf32>
    %4 = vector.broadcast %3 : vector<1x128xf32> to vector<8x128xf32>
    %5 = arith.addf %2, %4 : vector<8x128xf32>
    %c0_5 = arith.constant 0 : index
    %c0_6 = arith.constant 0 : index
    %6 = vector.load %arg4[%c0_5, %c0_6] : memref<128x128xf32, #tpu.memory_space<vmem>>, vector<128x128xf32>
    %cst_7 = arith.constant dense<0.000000e+00> : vector<8x128xf32>
    %7 = tpu.matmul %5, %6, %cst_7 {dimension_numbers = #tpu.dot_dimension_numbers<[1], [1], [0], [0], [0, 0, 1, 0], [], []>} : vector<8x128xf32>, vector<128x128xf32>, vector<8x128xf32> -> vector<8x128xf32>
    %c0_8 = arith.constant 0 : index
    %c0_9 = arith.constant 0 : index
    %8 = vector.load %arg5[%c0_8, %c0_9] : memref<1x128xf32, #tpu.memory_space<vmem>>, vector<1x128xf32>
    %9 = vector.broadcast %8 : vector<1x128xf32> to vector<8x128xf32>
    %10 = arith.addf %7, %9 : vector<8x128xf32>
    %cst_10 = arith.constant dense<0xFF800000> : vector<128xf32>
    %11 = vector.multi_reduction <maximumf>, %10, %cst_10 [0] : vector<8x128xf32> to vector<128xf32>
    %12 = vector.shape_cast %11 : vector<128xf32> to vector<1x128xf32>
    %13 = vector.broadcast %12 : vector<1x128xf32> to vector<8x128xf32>
    %14 = arith.subf %10, %13 : vector<8x128xf32>
    %15 = math.exp %14 : vector<8x128xf32>
    %cst_11 = arith.constant dense<0.000000e+00> : vector<128xf32>
    %16 = vector.multi_reduction <add>, %15, %cst_11 [0] : vector<8x128xf32> to vector<128xf32>
    %17 = vector.shape_cast %16 : vector<128xf32> to vector<1x128xf32>
    %18 = math.log %17 : vector<1x128xf32>
    %19 = vector.broadcast %18 : vector<1x128xf32> to vector<8x128xf32>
    %20 = arith.subf %14, %19 : vector<8x128xf32>
    %c0_12 = arith.constant 0 : index
    %c0_13 = arith.constant 0 : index
    %21 = vector.load %arg6[%c0_12, %c0_13] : memref<8x128xf32, #tpu.memory_space<vmem>>, vector<8x128xf32>
    tpu.vector_store %arg6[%c0_12, %c0_13], %20 {strides = array<i32>} : memref<8x128xf32, #tpu.memory_space<vmem>>, vector<8x128xf32>,
    return
  }
  func.func @transform_0(%arg0: i32) -> (i32, i32) {
    %c0_i32 = arith.constant 0 : i32
    %c0_i32_0 = arith.constant 0 : i32
    %c0_i32_1 = arith.constant 0 : i32
    return %c0_i32, %c0_i32_0 : i32, i32
  }
  func.func @transform_1(%arg0: i32) -> (i32, i32) {
    %c0_i32 = arith.constant 0 : i32
    %c0_i32_0 = arith.constant 0 : i32
    %c0_i32_1 = arith.constant 0 : i32
    return %c0_i32, %c0_i32_0 : i32, i32
  }
  func.func @transform_2(%arg0: i32) -> (i32, i32) {
    %c0_i32 = arith.constant 0 : i32
    %c0_i32_0 = arith.constant 0 : i32
    %c0_i32_1 = arith.constant 0 : i32
    return %c0_i32, %c0_i32_0 : i32, i32
  }
  func.func @transform_3(%arg0: i32) -> (i32, i32) {
    %c0_i32 = arith.constant 0 : i32
    %c0_i32_0 = arith.constant 0 : i32
    return %arg0, %c0_i32 : i32, i32
  }
  func.func @transform_4(%arg0: i32) -> (i32, i32) {
    %c0_i32 = arith.constant 0 : i32
    %c0_i32_0 = arith.constant 0 : i32
    return %c0_i32, %arg0 : i32, i32
  }
  func.func @transform_5(%arg0: i32) -> (i32, i32) {
    %c0_i32 = arith.constant 0 : i32
    %c0_i32_0 = arith.constant 0 : i32
    return %c0_i32, %arg0 : i32, i32
  }
}

</mosaic_0001>

<bundles_post_ra>
// kernel: word_embedding_forward.1
= control target key start
LH: loop header
LB: loop body
LE: loop exit
PB: predicated region body
PF: predicated region fallthrough
CT: control target
= control target key end

     0   :  { %10 = vsyncpa [#allocation3], 0  ;;  %s543_s0 = inlined_call_operand.vmem [shape: f32[8,128], index: 0, kind: input, shape index: {}]   ;;  %s544_s1 = inlined_call_operand.hbm [shape: f32[128,128], index: 1, kind: input, shape index: {}]   ;;  %s545_s2 = inlined_call_operand.vmem [shape: f32[1,128], index: 2, kind: input, shape index: {}]   ;;  %s546_s3 = inlined_call_operand.hbm [shape: f32[128,128], index: 3, kind: input, shape index: {}]   ;;  %s547_s4 = inlined_call_operand.vmem [shape: f32[1,128], index: 4, kind: input, shape index: {}]   ;;  %s548_s5 = inlined_call_operand.hbm [shape: f32[8,128], index: 5, kind: output, shape index: {}]  }
   0x1   :  { %11 = vsyncpa [#allocation6], 0 }
   0x2   :  { %12 = vsyncpa [#allocation4], 0  ;;  %s454_s18 = smov [#allocation2]  }
   0x3   :  { %s20_s19 = sshll.u32 %s454_s18, 4  ;;  %s21_s19 = int_to_ptr.vmem [resolvable:$true] %s20_s19 }
   0x4   :  { %s396_s20 = scalar_lea.vmem %s21_s19, 2048  ;;  %p401_p1 = scmp.lt.s32.totalorder %s21_s19, %s21_s19 }
   0x5   :  { %p397_p0 = scmp.ne.s32.totalorder %s21_s19, %s396_s20  ;;  %p402_p2 = scmp.lt.s32.totalorder %s396_s20, %s396_s20 }
   0x7   :  { %p403_p3 = por %p402_p2, %p401_p1 }
   0x9   :  { %p404_p4 = pnand %p403_p3, %p397_p0 }
   0xb   :  { %407 = shalt.err (!%p404_p4)
}
   0xc   :  { %s455_s21 = smov 128   ;;  %s456_s22 = smov 8  }
   0xd   :  { %26 = dma.hbm_to_vmem [thread:$0]  %s544_s1, 2048, %s21_s19, [#allocation3], %s455_s21, %s455_s21, %s456_s22  }
   0xe   :  { %s457_s25 = smov [#allocation5]  }
   0xf   :  { %s34_s26 = sshll.u32 %s457_s25, 4  ;;  %s35_s26 = int_to_ptr.vmem [resolvable:$true] %s34_s26 }
  0x10   :  { %s416_s27 = scalar_lea.vmem %s35_s26, 2048  ;;  %p421_p6 = scmp.lt.s32.totalorder %s35_s26, %s35_s26 }
  0x11   :  { %p417_p5 = scmp.ne.s32.totalorder %s35_s26, %s416_s27  ;;  %p422_p7 = scmp.lt.s32.totalorder %s416_s27, %s416_s27 }
  0x13   :  { %p423_p8 = por %p422_p7, %p421_p6 }
  0x15   :  { %p424_p9 = pnand %p423_p8, %p417_p5 }
  0x17   :  { %427 = shalt.err (!%p424_p9)
}
  0x18   :  { %40 = dma.hbm_to_vmem [thread:$0]  %s546_s3, 2048, %s35_s26, [#allocation6], %s455_s21, %s455_s21, %s456_s22  }
  0x19   :  { %448 = dma.done.wait [#allocation3], 2048  }
  0x1a   :  { %449 = vsyncadd [#allocation3], 4294965248 }
  0x1b   :  { %450 = dma.done.wait [#allocation6], 2048  }
  0x1c   :  { %451 = vsyncadd [#allocation6], 4294965248  ;;  %v458_v0 = vmov 0.0   ;;  %vm459_vm0 = vmmov 0   ;;  %v65_v1 = vld [vmem:[#allocation2 + $0x78] sm:$0xff]  ;;  %v64_v2 = vld [vmem:[#allocation2 + $0x70] sm:$0xff] }
  0x1d   :  { %307 = vmatprep.subr.mxu0 %v458_v0  ;;  %339 = vmatprep.mubr.msk.f32.mxu0 %vm459_vm0, %v458_v0  ;;  %v158_v3 = vld [vmem:[#allocation5 + $0x78] sm:$0xff]  ;;  %v63_v4 = vld [vmem:[#allocation2 + $0x68] sm:$0xff]  ;;  %v157_v5 = vld [vmem:[#allocation5 + $0x70] sm:$0xff] }
  0x1e   :  { %342 = vmatprep.subr.mxu1 %v458_v0  ;;  %374 = vmatprep.mubr.msk.f32.mxu1 %vm459_vm0, %v458_v0  ;;  %v62_v6 = vld [vmem:[#allocation2 + $0x60] sm:$0xff]  ;;  %v156_v7 = vld [vmem:[#allocation5 + $0x68] sm:$0xff]  ;;  %v61_v8 = vld [vmem:[#allocation2 + $0x58] sm:$0xff] }
  0x1f   :  { %308 = vmatpush3.xpose.msra.mxu0 %v65_v1  ;;  %343 = vmatpush3.xpose.msra.mxu1 %v158_v3  ;;  %v155_v9 = vld [vmem:[#allocation5 + $0x60] sm:$0xff]  ;;  %v60_v10 = vld [vmem:[#allocation2 + $0x50] sm:$0xff]  ;;  %v154_v11 = vld [vmem:[#allocation5 + $0x58] sm:$0xff] }
  0x20   :  { %309 = vmatprep.subr.mxu0 %v458_v0  ;;  %344 = vmatprep.subr.mxu1 %v458_v0  ;;  %v59_v12 = vld [vmem:[#allocation2 + $0x48] sm:$0xff]  ;;  %v153_v13 = vld [vmem:[#allocation5 + $0x50] sm:$0xff]  ;;  %v58_v14 = vld [vmem:[#allocation2 + $0x40] sm:$0xff] }
  0x21   :  { %v152_v15 = vld [vmem:[#allocation5 + $0x48] sm:$0xff]  ;;  %v57_v16 = vld [vmem:[#allocation2 + $0x38] sm:$0xff]  ;;  %v151_v17 = vld [vmem:[#allocation5 + $0x40] sm:$0xff] }
  0x22   :  { %v56_v18 = vld [vmem:[#allocation2 + $0x30] sm:$0xff]  ;;  %v150_v19 = vld [vmem:[#allocation5 + $0x38] sm:$0xff]  ;;  %v55_v20 = vld [vmem:[#allocation2 + $0x28] sm:$0xff] }
  0x23   :  { %310 = vmatpush3.xpose.msra.mxu0 %v64_v2  ;;  %345 = vmatpush3.xpose.msra.mxu1 %v157_v5  ;;  %v149_v21 = vld [vmem:[#allocation5 + $0x30] sm:$0xff]  ;;  %v54_v22 = vld [vmem:[#allocation2 + $0x20] sm:$0xff]  ;;  %v148_v23 = vld [vmem:[#allocation5 + $0x28] sm:$0xff] }
  0x24   :  { %311 = vmatprep.subr.mxu0 %v458_v0  ;;  %346 = vmatprep.subr.mxu1 %v458_v0  ;;  %v53_v24 = vld [vmem:[#allocation2 + $0x18] sm:$0xff]  ;;  %v147_v25 = vld [vmem:[#allocation5 + $0x20] sm:$0xff]  ;;  %v52_v26 = vld [vmem:[#allocation2 + $0x10] sm:$0xff] }
  0x25   :  { %v146_v27 = vld [vmem:[#allocation5 + $0x18] sm:$0xff]  ;;  %v51_v28 = vld [vmem:[#allocation2 + $0x8] sm:$0xff]  ;;  %v145_v29 = vld [vmem:[#allocation5 + $0x10] sm:$0xff] }
  0x26   :  { %v50_v30 = vld [vmem:[#allocation2] sm:$0xff]  ;;  %v144_v31 = vld [vmem:[#allocation5 + $0x8] sm:$0xff] }
  0x27   :  { %312 = vmatpush3.xpose.msra.mxu0 %v63_v4  ;;  %347 = vmatpush3.xpose.msra.mxu1 %v156_v7  ;;  %v49_v32 = vld [vmem:[%s543_s0] sm:$0xff]  ;;  %s460_s0 = smov [#allocation7]  }
  0x28   :  { %313 = vmatprep.subr.mxu0 %v458_v0  ;;  %348 = vmatprep.subr.mxu1 %v458_v0  ;;  %v143_v33 = vld [vmem:[#allocation5] sm:$0xff] }
  0x29   :  { %v271_v34 = vld [vmem:[%s545_s2] ss:$0 sm:$0xff]  ;;  %s261_s2 = sshll.u32 %s460_s0, 4  ;;  %s262_s2 = int_to_ptr.vmem [resolvable:$true] %s261_s2 }
  0x2a   :  { %v272_v38 = vld [vmem:[%s547_s4] ss:$0 sm:$0xff]  ;;  %s428_s4 = scalar_lea.vmem %s262_s2, 128  ;;  %p433_p11 = scmp.lt.s32.totalorder %s262_s2, %s262_s2 }
  0x2b   :  { %314 = vmatpush3.xpose.msra.mxu0 %v62_v6  ;;  %349 = vmatpush3.xpose.msra.mxu1 %v155_v9  ;;  %p429_p10 = scmp.ne.s32.totalorder %s262_s2, %s428_s4  ;;  %p434_p12 = scmp.lt.s32.totalorder %s428_s4, %s428_s4 }
  0x2c   :  { %315 = vmatprep.subr.mxu0 %v458_v0  ;;  %350 = vmatprep.subr.mxu1 %v458_v0 }
  0x2d   :  { %p435_p13 = por %p434_p12, %p433_p11 }
  0x2f   :  { %316 = vmatpush3.xpose.msra.mxu0 %v61_v8  ;;  %351 = vmatpush3.xpose.msra.mxu1 %v154_v11  ;;  %p436_p0 = pnand %p435_p13, %p429_p10 }
  0x30   :  { %317 = vmatprep.subr.mxu0 %v458_v0  ;;  %352 = vmatprep.subr.mxu1 %v458_v0 }
  0x33   :  { %318 = vmatpush3.xpose.msra.mxu0 %v60_v10  ;;  %353 = vmatpush3.xpose.msra.mxu1 %v153_v13 }
  0x34   :  { %319 = vmatprep.subr.mxu0 %v458_v0  ;;  %354 = vmatprep.subr.mxu1 %v458_v0 }
  0x37   :  { %320 = vmatpush3.xpose.msra.mxu0 %v59_v12  ;;  %355 = vmatpush3.xpose.msra.mxu1 %v152_v15 }
  0x38   :  { %321 = vmatprep.subr.mxu0 %v458_v0  ;;  %356 = vmatprep.subr.mxu1 %v458_v0 }
  0x3b   :  { %322 = vmatpush3.xpose.msra.mxu0 %v58_v14  ;;  %357 = vmatpush3.xpose.msra.mxu1 %v151_v17 }
  0x3c   :  { %323 = vmatprep.subr.mxu0 %v458_v0  ;;  %358 = vmatprep.subr.mxu1 %v458_v0 }
  0x3f   :  { %324 = vmatpush3.xpose.msra.mxu0 %v57_v16  ;;  %359 = vmatpush3.xpose.msra.mxu1 %v150_v19 }
  0x40   :  { %325 = vmatprep.subr.mxu0 %v458_v0  ;;  %360 = vmatprep.subr.mxu1 %v458_v0 }
  0x43   :  { %326 = vmatpush3.xpose.msra.mxu0 %v56_v18  ;;  %361 = vmatpush3.xpose.msra.mxu1 %v149_v21 }
  0x44   :  { %327 = vmatprep.subr.mxu0 %v458_v0  ;;  %362 = vmatprep.subr.mxu1 %v458_v0 }
  0x47   :  { %328 = vmatpush3.xpose.msra.mxu0 %v55_v20  ;;  %363 = vmatpush3.xpose.msra.mxu1 %v148_v23 }
  0x48   :  { %329 = vmatprep.subr.mxu0 %v458_v0  ;;  %364 = vmatprep.subr.mxu1 %v458_v0 }
  0x4b   :  { %330 = vmatpush3.xpose.msra.mxu0 %v54_v22  ;;  %365 = vmatpush3.xpose.msra.mxu1 %v147_v25 }
  0x4c   :  { %331 = vmatprep.subr.mxu0 %v458_v0  ;;  %366 = vmatprep.subr.mxu1 %v458_v0 }
  0x4f   :  { %332 = vmatpush3.xpose.msra.mxu0 %v53_v24  ;;  %367 = vmatpush3.xpose.msra.mxu1 %v146_v27 }
  0x50   :  { %333 = vmatprep.subr.mxu0 %v458_v0  ;;  %368 = vmatprep.subr.mxu1 %v458_v0 }
  0x53   :  { %334 = vmatpush3.xpose.msra.mxu0 %v52_v26  ;;  %369 = vmatpush3.xpose.msra.mxu1 %v145_v29 }
  0x54   :  { %335 = vmatprep.subr.mxu0 %v458_v0  ;;  %370 = vmatprep.subr.mxu1 %v458_v0 }
  0x57   :  { %336 = vmatpush3.xpose.msra.mxu0 %v51_v28  ;;  %371 = vmatpush3.xpose.msra.mxu1 %v144_v31 }
  0x58   :  { %337 = vmatprep.subr.mxu0 %v458_v0  ;;  %372 = vmatprep.subr.mxu1 %v458_v0 }
  0x5b   :  { %338 = vmatpush3.xpose.msra.mxu0 %v50_v30  ;;  %373 = vmatpush3.xpose.msra.mxu1 %v143_v33 }
  0x5e   :  { %340 = vmatmul.mubr.f32.vlgmr.msra.gmra.mxu0 %v49_v32 }
 0x11e   :  { %v139_v35 = vpop.f32.mrf.mxu0 }
 0x11f   :  { %v140_v36 = vadd.f32 %v271_v34, %v139_v35 }
 0x120   :  { %v341_v37 = vpop.f32.mrf.mxu0 }
 0x121   :  { %375 = vmatmul.mubr.f32.vlgmr.msra.gmra.mxu1 %v140_v36 }
 0x1e1   :  { %v232_v39 = vpop.f32.mrf.mxu1 }
 0x1e2   :  { %v233_v40 = vadd.f32 %v272_v38, %v232_v39 }
 0x1e3   :  { %v376_v41 = vpop.f32.mrf.mxu1 }
 0x1e4   :  { %v236_v42 = vrot.slane %v233_v40, 4 }
 0x1e6   :  { %v237_v43 = vmax.f32 %v233_v40, %v236_v42 }
 0x1e8   :  { %v238_v44 = vrot.slane %v237_v43, 2 }
 0x1ea   :  { %v239_v45 = vmax.f32 %v237_v43, %v238_v44 }
 0x1ec   :  { %v240_v46 = vrot.slane %v239_v45, 1 }
 0x1ee   :  { %v241_v47 = vmax.f32 %v239_v45, %v240_v46 }
 0x1f0   :  { %v242_v48 = vsub.f32 %v233_v40, %v241_v47 }
 0x1f2   :  { %v243_v49 = vmul.f32 1.442695, %v242_v48 }
 0x1f4   :  { %384 = vpow2.f32 %v243_v49 }
 0x201   :  { %v385_v50 = vpop.eup %384 }
 0x202   :  { %v245_v51 = vrot.slane %v385_v50, 4 }
 0x204   :  { %v246_v52 = vadd.f32 %v385_v50, %v245_v51 }
 0x206   :  { %v247_v53 = vrot.slane %v246_v52, 2 }
 0x208   :  { %v248_v54 = vadd.f32 %v247_v53, %v246_v52 }
 0x20a   :  { %v249_v55 = vrot.slane %v248_v54, 1 }
 0x20c   :  { %v250_v56 = vadd.f32 %v249_v55, %v248_v54 }
 0x20e   :  { %386 = vlog2.f32 %v250_v56 }
 0x21b   :  { %v387_v57 = vpop.eup %386 }
 0x21c   :  { %v252_v58 = vmul.f32 0.6931472, %v387_v57 }
 0x21e   :  { %v253_v59 = vsub.f32 %v242_v48, %v252_v58 }
 0x220   :  { %254 = vst [vmem:[#allocation7] sm:$0xff] %v253_v59 }
 0x221   :  { %439 = shalt.err (!%p436_p0)
}
 0x222   :  { %264 = dma.vmem_to_hbm [thread:$0]  %s262_s2, 128, %s548_s5, [#allocation4]  }
 0x223   :  { %452 = dma.done.wait [#allocation4], 128  }
 0x224   :  { %453 = vsyncadd [#allocation4], 4294967168 }
 0x225   :  { %268 = vsyncpa [#allocation3], 1 }
 0x226   :  { %269 = vsyncpa [#allocation6], 1 }
 0x227   :  { %270 = vsyncpa [#allocation4], 1 }

</bundles_post_ra>
